<compile_context>
chip_gen: v6e
topology: v6e:2x2x1
jax: 0.10.0
libtpu: 0.0.40
codegen_flags: <defaults>
</compile_context>

<pallas_src>
import jax
import jax.numpy as jnp
from jax import lax
from jax.experimental import pallas as pl
from jax.experimental.pallas import tpu as pltpu


_BLOCK_BYTES = 6 * 1024 * 1024  # per-input per-block budget (x2 inputs x2 bufs ~24 MiB)


def _round_up(x, m):
    return ((x + m - 1) // m) * m


def l2_loss(output, target):
    assert output.shape == target.shape, (output.shape, target.shape)
    assert output.dtype == target.dtype, (output.dtype, target.dtype)
    N, C, H, W = output.shape
    HW = H * W
    itemsize = jnp.dtype(output.dtype).itemsize

    # ---- layout: flatten pixels to a lane-dense (R, 128) plane per channel ----
    x = output.reshape(N, C, HW)
    y = target.reshape(N, C, HW)
    rem = HW % 128
    if rem:
        # TODO(synk): rare for FlowNet shapes; a fully pad-free path would keep
        # (N, C, HW) with channels on sublanes. Here we pad only to the next
        # 128 multiple (one small extra HBM pass), NOT to the tile multiple.
        pad = 128 - rem
        x = jnp.pad(x, ((0, 0), (0, 0), (0, pad)))
        y = jnp.pad(y, ((0, 0), (0, 0), (0, pad)))
    R = x.shape[-1] // 128
    x = x.reshape(N, C, R, 128)
    y = y.reshape(N, C, R, 128)

    # ---- pixel-row tile size (TR rows of 128 pixels per grid step) -----------
    row_bytes = C * 128 * itemsize
    budget_rows = max(8, _BLOCK_BYTES // row_bytes)
    if R < 8:
        TR = R                        # block == full dim (allowed even if not %8)
    else:
        G = 32 if (R >= 32 and budget_rows >= 32) else 8
        cap = (R // G) * G            # never let the first block exceed the dim
        TR = max(G, min((budget_rows // G) * G, cap))
        nt0 = pl.cdiv(R, TR)
        TR = max(G, min(TR, _round_up(pl.cdiv(R, nt0), G)))   # balance tiles
    # TODO(synk): for very large C even TR=8 can exceed VMEM; that would need a
    # channel-tiled reduction (per-pixel squared-sum scratch, sqrt on last C step).

    num_tiles = pl.cdiv(R, TR)
    SPLIT = 2 if num_tiles >= 2 else 1          # keep both v7x TCs busy at N == 1
    tiles_per_split = pl.cdiv(num_tiles, SPLIT)

    if TR % 32 == 0:
        CHUNK = 32
    elif TR % 16 == 0:
        CHUNK = 16
    elif TR % 8 == 0:
        CHUNK = 8
    else:
        CHUNK = TR                               # tiny-R case
    FOLD = min(8, CHUNK)
    num_chunks = TR // CHUNK
    needs_mask = (num_tiles * TR * 128) != HW

    def kernel(pred_ref, tgt_ref, acc_ref):
        # pred_ref / tgt_ref: (C, TR, 128); acc_ref: (8, 128) f32, resident
        # across the innermost (reduction) grid axis.
        s = pl.program_id(1)
        p = pl.program_id(2)

        @pl.when(p == 0)
        def _init():
            acc_ref[...] = jnp.zeros_like(acc_ref)

        tile = s * tiles_per_split + p

        @pl.when(tile < num_tiles)
        def _accumulate():
            if needs_mask:
                base = (lax.broadcasted_iota(jnp.int32, (CHUNK, 128), 0) * 128
                        + lax.broadcasted_iota(jnp.int32, (CHUNK, 128), 1))
            row0 = tile * TR

            def body(i, part):
                r = pl.multiple_of(i * CHUNK, CHUNK)
                if num_chunks == 1:
                    xc = pred_ref[...].astype(jnp.float32)
                    yc = tgt_ref[...].astype(jnp.float32)
                else:
                    xc = pred_ref[:, pl.ds(r, CHUNK), :].astype(jnp.float32)
                    yc = tgt_ref[:, pl.ds(r, CHUNK), :].astype(jnp.float32)
                d = xc - yc
                sq = jnp.sum(d * d, axis=0)            # (CHUNK, 128) -- VPU adds
                norms = jnp.sqrt(sq)                   # EUP
                if needs_mask:
                    pix = base + (row0 + r) * 128      # flattened pixel index
                    norms = jnp.where(pix < HW, norms, 0.0)
                # fold CHUNK rows into FOLD rows with aligned static slices
                pc = norms[0:FOLD, :]
                for rr in range(FOLD, CHUNK, FOLD):
                    pc = pc + norms[rr:rr + FOLD, :]
                return part + pc

            init = jnp.zeros((FOLD, 128), jnp.float32)
            if num_chunks == 1:
                part = body(0, init)
            else:
                part = lax.fori_loop(0, num_chunks, body, init)

            if FOLD == 8:
                acc_ref[...] = acc_ref[...] + part
            else:
                acc_ref[0:FOLD, :] = acc_ref[0:FOLD, :] + part

    def row_block_index(s, p):
        # Split-overflow tiles clamp to the last valid block (DMA stays in
        # bounds); the kernel skips them via `tile < num_tiles`.
        return jnp.minimum(s * tiles_per_split + p, num_tiles - 1)

    block_bytes = C * TR * 128 * itemsize
    vmem_limit = int(max(32 * 1024 * 1024, 2 * 2 * block_bytes + (8 << 20)))

    cost = pl.CostEstimate(
        flops=int(3 * N * C * HW + 2 * N * HW),
        transcendentals=int(N * HW),
        bytes_accessed=int(2 * N * C * HW * itemsize + N * SPLIT * 8 * 128 * 4),
    )

    partials = pl.pallas_call(
        kernel,
        out_shape=jax.ShapeDtypeStruct((N, SPLIT, 8, 128), jnp.float32),
        grid_spec=pl.GridSpec(
            grid=(N, SPLIT, tiles_per_split),
            in_specs=[
                pl.BlockSpec((None, C, TR, 128),
                             lambda b, s, p: (b, 0, row_block_index(s, p), 0)),
                pl.BlockSpec((None, C, TR, 128),
                             lambda b, s, p: (b, 0, row_block_index(s, p), 0)),
            ],
            out_specs=pl.BlockSpec((None, None, 8, 128),
                                   lambda b, s, p: (b, s, 0, 0)),
        ),
        compiler_params=pltpu.CompilerParams(
            dimension_semantics=("parallel", "parallel", "arbitrary"),
            vmem_limit_bytes=vmem_limit,
        ),
        cost_estimate=cost,
    )(x, y)

    # Tiny final cross-lane reduction + mean over the true pixel count.
    return jnp.sum(partials) / jnp.float32(N * HW)


def l2_loss_ref(output, target):
    diff = output.astype(jnp.float32) - target.astype(jnp.float32)
    return jnp.mean(jnp.sqrt(jnp.sum(diff * diff, axis=1)))


if __name__ == "__main__":
    key = jax.random.PRNGKey(0)
    k1, k2 = jax.random.split(key)
    N, C, H, W = 2, 4, 16, 16
    output = jax.random.normal(k1, (N, C, H, W), dtype=jnp.float32)
    target = jax.random.normal(k2, (N, C, H, W), dtype=jnp.float32)

    loss = jax.block_until_ready(l2_loss(output, target))
    ref = jax.block_until_ready(l2_loss_ref(output, target))

    assert jnp.allclose(loss, ref, rtol=1e-5, atol=1e-5), (loss, ref)
    print("KERNEL_OK")
</pallas_src>

<mosaic_0001>
module attributes {stable_mosaic.version = 11 : i64} {
  func.func @kernel(%arg0: i32, %arg1: i32, %arg2: i32, %arg3: memref<1x4x2x128xf32, #tpu.memory_space<vmem>>, %arg4: memref<1x4x2x128xf32, #tpu.memory_space<vmem>>, %arg5: memref<1x1x8x128xf32, #tpu.memory_space<vmem>>) attributes {dimension_semantics = [#tpu.dimension_semantics<parallel>, #tpu.dimension_semantics<parallel>, #tpu.dimension_semantics<arbitrary>], iteration_bounds = array<i64: 2, 1, 1>, scalar_prefetch = 0 : i64, scratch_operands = 0 : i64, tpu.core_type = #tpu.core_type<tc>, window_params = [{transform_indices = @transform_0, window_bounds = array<i64: 1, 4, 2, 128>}, {transform_indices = @transform_1, window_bounds = array<i64: 1, 4, 2, 128>}, {transform_indices = @transform_2, window_bounds = array<i64: 1, 1, 8, 128>}]} {
    %c0_i32 = arith.constant 0 : i32
    %0 = arith.cmpi eq, %arg2, %c0_i32 : i32
    %1 = arith.extui %0 : i1 to i32
    %c0_i32_0 = arith.constant 0 : i32
    %2 = arith.cmpi ne, %1, %c0_i32_0 : i32
    scf.if %2 {
      %cst = arith.constant 0.000000e+00 : f32
      %8 = vector.broadcast %cst : f32 to vector<8x128xf32>
      %c0 = arith.constant 0 : index
      %c0_3 = arith.constant 0 : index
      %c0_4 = arith.constant 0 : index
      %c0_5 = arith.constant 0 : index
      %9 = vector.load %arg5[%c0, %c0_3, %c0_4, %c0_5] : memref<1x1x8x128xf32, #tpu.memory_space<vmem>>, vector<1x1x8x128xf32>
      %10 = vector.shape_cast %9 : vector<1x1x8x128xf32> to vector<8x128xf32>
      %11 = vector.shape_cast %8 : vector<8x128xf32> to vector<1x1x8x128xf32>
      tpu.vector_store %arg5[%c0, %c0_3, %c0_4, %c0_5], %11 {strides = array<i32>} : memref<1x1x8x128xf32, #tpu.memory_space<vmem>>, vector<1x1x8x128xf32>,
    } else {
    }
    %c1_i32 = arith.constant 1 : i32
    %3 = arith.muli %arg1, %c1_i32 : i32
    %4 = arith.addi %3, %arg2 : i32
    %c1_i32_1 = arith.constant 1 : i32
    %5 = arith.cmpi slt, %4, %c1_i32_1 : i32
    %6 = arith.extui %5 : i1 to i32
    %c0_i32_2 = arith.constant 0 : i32
    %7 = arith.cmpi ne, %6, %c0_i32_2 : i32
    scf.if %7 {
      %cst = arith.constant 0.000000e+00 : f32
      %8 = vector.broadcast %cst : f32 to vector<2x128xf32>
      %c0 = arith.constant 0 : index
      %c0_3 = arith.constant 0 : index
      %c0_4 = arith.constant 0 : index
      %c0_5 = arith.constant 0 : index
      %9 = vector.load %arg3[%c0, %c0_3, %c0_4, %c0_5] : memref<1x4x2x128xf32, #tpu.memory_space<vmem>>, vector<1x4x2x128xf32>
      %10 = vector.shape_cast %9 : vector<1x4x2x128xf32> to vector<4x2x128xf32>
      %c0_6 = arith.constant 0 : index
      %c0_7 = arith.constant 0 : index
      %c0_8 = arith.constant 0 : index
      %c0_9 = arith.constant 0 : index
      %11 = vector.load %arg4[%c0_6, %c0_7, %c0_8, %c0_9] : memref<1x4x2x128xf32, #tpu.memory_space<vmem>>, vector<1x4x2x128xf32>
      %12 = vector.shape_cast %11 : vector<1x4x2x128xf32> to vector<4x2x128xf32>
      %13 = arith.subf %10, %12 : vector<4x2x128xf32>
      %14 = arith.mulf %13, %13 : vector<4x2x128xf32>
      %cst_10 = arith.constant dense<0.000000e+00> : vector<2x128xf32>
      %15 = vector.multi_reduction <add>, %14, %cst_10 [0] : vector<4x2x128xf32> to vector<2x128xf32>
      %16 = math.sqrt %15 : vector<2x128xf32>
      %17 = arith.addf %8, %16 : vector<2x128xf32>
      %c0_11 = arith.constant 0 : index
      %c0_12 = arith.constant 0 : index
      %c0_13 = arith.constant 0 : index
      %c0_14 = arith.constant 0 : index
      %18 = vector.load %arg5[%c0_11, %c0_12, %c0_13, %c0_14] : memref<1x1x8x128xf32, #tpu.memory_space<vmem>>, vector<1x1x2x128xf32>
      %19 = vector.shape_cast %18 : vector<1x1x2x128xf32> to vector<2x128xf32>
      %20 = arith.addf %19, %17 : vector<2x128xf32>
      %c0_15 = arith.constant 0 : index
      %c0_16 = arith.constant 0 : index
      %c0_17 = arith.constant 0 : index
      %c0_18 = arith.constant 0 : index
      %21 = vector.load %arg5[%c0_15, %c0_16, %c0_17, %c0_18] : memref<1x1x8x128xf32, #tpu.memory_space<vmem>>, vector<1x1x2x128xf32>
      %22 = vector.shape_cast %21 : vector<1x1x2x128xf32> to vector<2x128xf32>
      %23 = vector.shape_cast %20 : vector<2x128xf32> to vector<1x1x2x128xf32>
      tpu.vector_store %arg5[%c0_15, %c0_16, %c0_17, %c0_18], %23 {strides = array<i32>} : memref<1x1x8x128xf32, #tpu.memory_space<vmem>>, vector<1x1x2x128xf32>,
    } else {
    }
    return
  }
  func.func @transform_0(%arg0: i32, %arg1: i32, %arg2: i32) -> (i32, i32, i32, i32) {
    %c1_i32 = arith.constant 1 : i32
    %0 = arith.muli %arg1, %c1_i32 : i32
    %1 = arith.addi %0, %arg2 : i32
    %c0_i32 = arith.constant 0 : i32
    %2 = arith.minsi %1, %c0_i32 : i32
    %c0_i32_0 = arith.constant 0 : i32
    %c0_i32_1 = arith.constant 0 : i32
    %c0_i32_2 = arith.constant 0 : i32
    return %arg0, %c0_i32_0, %2, %c0_i32_1 : i32, i32, i32, i32
  }
  func.func @transform_1(%arg0: i32, %arg1: i32, %arg2: i32) -> (i32, i32, i32, i32) {
    %c1_i32 = arith.constant 1 : i32
    %0 = arith.muli %arg1, %c1_i32 : i32
    %1 = arith.addi %0, %arg2 : i32
    %c0_i32 = arith.constant 0 : i32
    %2 = arith.minsi %1, %c0_i32 : i32
    %c0_i32_0 = arith.constant 0 : i32
    %c0_i32_1 = arith.constant 0 : i32
    %c0_i32_2 = arith.constant 0 : i32
    return %arg0, %c0_i32_0, %2, %c0_i32_1 : i32, i32, i32, i32
  }
  func.func @transform_2(%arg0: i32, %arg1: i32, %arg2: i32) -> (i32, i32, i32, i32) {
    %c0_i32 = arith.constant 0 : i32
    %c0_i32_0 = arith.constant 0 : i32
    %c0_i32_1 = arith.constant 0 : i32
    return %arg0, %arg1, %c0_i32, %c0_i32_0 : i32, i32, i32, i32
  }
}

</mosaic_0001>

<bundles_post_ra>
// kernel: tpu_custom_call.1
= control target key start
LH: loop header
LB: loop body
LE: loop exit
PB: predicated region body
PF: predicated region fallthrough
CT: control target
= control target key end

     0   :  { %7 = vsyncpa [#allocation3], 0  ;;  %s856_s0 = inlined_call_operand.hbm [shape: f32[2,4,2,128], index: 0, kind: input, shape index: {}]   ;;  %s857_s1 = inlined_call_operand.hbm [shape: f32[2,4,2,128], index: 1, kind: input, shape index: {}]   ;;  %s858_s2 = inlined_call_operand.hbm [shape: f32[2,1,8,128], index: 2, kind: output, shape index: {}]  }
   0x1   :  { %9 = vsyncpa [#allocation3 + $0x1], 0 }
   0x2   :  { %10 = vsyncpa [#allocation6], 0 }
   0x3   :  { %12 = vsyncpa [#allocation6 + $0x1], 0 }
   0x4   :  { %13 = vsyncpa [#allocation4], 0 }
   0x5   :  { %15 = vsyncpa [#allocation4 + $0x1], 0  ;;  %s677_s9 = smov 0   ;;  %s679_s10 = smov 0  }
   0x6   :  { %s681_s11 = smov 0   ;;  %s683_s12 = smov 0  }
   0x7   :  { %s685_s13 = smov 0   ;;  %s687_s14 = smov 0  }
   0x8 LB: > { %s422_s15 = sadd.s32 4294967295, %s654_s14   ;;  %s423_s16 = sadd.s32 4294967294, %s654_s14   ;;  %s654_s14 = sphi %s687_s14, %s21_s14   ;;  %s650_s13 = sphi %s685_s13, %s870_s13   ;;  %s646_s12 = sphi %s683_s12, %s869_s12   ;;  %s642_s11 = sphi %s681_s11, %s868_s11   ;;  %s638_s10 = sphi %s679_s10, %s867_s10   ;;  %s634_s9 = sphi %s677_s9, %s866_s9  }
   0x9   : > { %s40_s17 = sadd.s32 1, %s650_s13  ;;  %s55_s18 = sadd.s32 1, %s642_s11 }
   0xa   : > { %p42_p0 = scmp.ge.s32.totalorder %s40_s17, 2  ;;  %p62_p1 = scmp.ne.s32.totalorder %s642_s11, %s638_s10 }
   0xb   : > { %p63_p2 = scmp.eq.s32.totalorder %s654_s14, 0  ;;  %p68_p3 = scmp.ne.s32.totalorder %s638_s10, %s634_s9 }
   0xc   : > { %s872_s17 = smov (%p42_p0, %s40_s17), 0  ;;  %p69_p5 = scmp.eq.s32.totalorder %s422_s15, 0 }
   0xd   : > { %p718_p4 = por %p63_p2, %p62_p1  ;;  %s50_s20 = ssub.s32 %s650_s13, %s872_s17 }
   0xe   : > { %p128_p6 = scmp.eq.s32.totalorder %s422_s15, 1  ;;  %p53_p7 = scmp.eq.s32.totalorder %s50_s20, 0 }
   0xf   : > { %p724_p8 = por %p69_p5, %p68_p3  ;;  %p134_p10 = scmp.eq.s32.totalorder %s423_s16, 1 }
  0x10   : > { %p728_p9 = por %p128_p6, %p62_p1  ;;  %p459_p13 = scmp.lt.s32.totalorder %s654_s14, 2 }
  0x11   : > { %s733_s23 = scalar_select %p53_p7, %s642_s11, %s55_s18  }
  0x12   : > { %p735_p11 = por %p134_p10, %p68_p3  ;;  %s742_s25 = sand.u32 1, %s642_s11  }
  0x13   : > { %s426_s26 = sshll.u32 %s742_s25, 3  ;;  %s440_s27 = sshll.u32 %s650_s13, 7 }
  0x14   : > { %s168_s30 = scalar_lea.hbm %s856_s0, %s440_s27  ;;  %s158_s3 = scalar_lea.vmem [#allocation2], %s426_s26 }
  0x15   : > { %s169_s4 = sshll.u32 %s158_s3, 4  ;;  %p755_p0 = pnand %p459_p13, %p718_p4  ;;  %s170_s4 = int_to_ptr.vmem [resolvable:$true] %s169_s4 }
  0x16   : > { %p432_p1 = scmp.ge.s32.totalorder %s654_s14, 1  ;;  %s155_s6 = scalar_lea.sflag [#allocation3], %s742_s25 }
  0x17   : > { %p516_p2 = pneg %p755_p0  ;;  %s527_s7 = scalar_lea.vmem %s170_s4, 128 }
  0x18   : > { %p528_p3 = scmp.ne.s32.totalorder %s170_s4, %s527_s7  ;;  %s656_s8 = smov [#allocation2]  }
  0x19   : > { %s532_s15 = sshll.u32 %s656_s8, 4  ;;  %s533_s15 = int_to_ptr.vmem [resolvable:$false] %s532_s15 }
  0x1a   : > { %p530_p5 = pnand %p528_p3, %p516_p2  ;;  %s534_s16 = scalar_lea.vmem %s533_s15, 256 }
  0x1b   : > { %p535_p4 = scmp.lt.s32.totalorder %s170_s4, %s533_s15  ;;  %p536_p7 = scmp.lt.s32.totalorder %s534_s16, %s527_s7 }
  0x1c   : > { %p531_p6 = pneg %p530_p5 }
  0x1d   : > { %p537_p10 = por %p536_p7, %p535_p4 }
  0x1f   : > { %p538_p13 = pnand %p537_p10, %p531_p6 }
  0x21   : > { %541 = shalt.err (!%p538_p13)
}
  0x22   : > { %s657_s18 = smov 32   ;;  %s658_s19 = smov 2  }
  0x23   : > { %451 = dma.hbm_to_vmem [thread:$0]  (!%p755_p0), %s168_s30, 128, %s170_s4, %s155_s6, %s657_s18, %s657_s18, %s658_s19  }
  0x24   : > { %p202_p3 = scmp.lt.s32.totalorder %s654_s14, 3  ;;  %s193_s29 = scalar_lea.hbm %s857_s1, %s440_s27 }
  0x25   : > { %s183_s7 = scalar_lea.vmem [#allocation5], %s426_s26  ;;  %s180_s15 = scalar_lea.sflag [#allocation6], %s742_s25 }
  0x26   : > { %p776_p5 = pnand %p432_p1, %p202_p3  ;;  %s194_s8 = sshll.u32 %s183_s7, 4  ;;  %s195_s8 = int_to_ptr.vmem [resolvable:$true] %s194_s8 }
  0x27   : > { %s555_s16 = scalar_lea.vmem %s195_s8, 128  ;;  %s659_s30 = smov [#allocation5]  }
  0x28   : > { %p556_p6 = scmp.ne.s32.totalorder %s195_s8, %s555_s16  ;;  %s560_s4 = sshll.u32 %s659_s30, 4  ;;  %s561_s4 = int_to_ptr.vmem [resolvable:$false] %s560_s4 }
  0x29   : > { %s562_s27 = scalar_lea.vmem %s561_s4, 256  ;;  %p563_p10 = scmp.lt.s32.totalorder %s195_s8, %s561_s4 }
  0x2a   : > { %p558_p4 = pnand %p556_p6, %p516_p2  ;;  %p564_p1 = scmp.lt.s32.totalorder %s562_s27, %s555_s16 }
  0x2c   : > { %p559_p7 = pneg %p558_p4  ;;  %p565_p13 = por %p564_p1, %p563_p10 }
  0x2e   : > { %p566_p3 = pnand %p565_p13, %p559_p7 }
  0x30   : > { %569 = shalt.err (!%p566_p3)
}
  0x31   : > { %454 = dma.hbm_to_vmem [thread:$0]  (!%p755_p0), %s193_s29, 128, %s195_s8, %s180_s15, %s657_s18, %s657_s18, %s658_s19  }
  0x32   : > { %206 = sbr.rel (%p776_p5) target bundleno = 105 (0x69), region = 28  ;;  %s791_s25 = sand.u32 (!%p776_p5), 1, %s638_s10  }
  0x33   : > { %s433_s26 = sshll.u32 (!%p776_p5), %s791_s25, 3  ;;  %s209_s6 = scalar_lea.sflag (!%p776_p5), [#allocation3], %s791_s25 }
  0x34   : > { %s212_s20 = scalar_lea.vmem (!%p776_p5), [#allocation2], %s433_s26 }
  0x37   : > { %621 = dma.done.wait (%p724_p8), %s209_s6, 128  }
  0x38   : > { %623 = vsyncadd (%p724_p8), %s209_s6, 4294967168  ;;  %s218_s5 = scalar_lea.sflag [#allocation6], %s791_s25  ;;  %s221_s18 = scalar_lea.vmem [#allocation5], %s433_s26 }
  0x39   : > { %625 = dma.done.wait (%p724_p8), %s218_s5, 128  }
  0x3a   : > { %627 = vsyncadd (%p724_p8), %s218_s5, 4294967168  ;;  %s804_s19 = scalar_lea.vmem [#allocation7], %s433_s26  ;;  %v660_v0 = vmov 0.0   ;;  %v263_v1 = vld [vmem:[%s212_s20] sm:$0x3]  ;;  %vm279_vm0 = vcmask 1041408  }
  0x3b   : > { %257 = vst [vmem:[%s804_s19] sm:$0xff] %v660_v0  ;;  %v264_v2 = vld [vmem:[%s212_s20 + $0x2] sm:$0x3]  ;;  %v265_v3 = vld [vmem:[%s212_s20 + $0x4] sm:$0x3]  ;;  %v266_v4 = vld [vmem:[%s212_s20 + $0x6] sm:$0x3] }
  0x3c   : > { %v267_v5 = vld [vmem:[%s221_s18] sm:$0x3]  ;;  %v268_v6 = vld [vmem:[%s221_s18 + $0x2] sm:$0x3]  ;;  %v269_v7 = vld [vmem:[%s221_s18 + $0x4] sm:$0x3] }
  0x3d   : > { %v270_v8 = vld [vmem:[%s221_s18 + $0x6] sm:$0x3]  ;;  %v271_v9 = vsub.f32 %v263_v1, %v267_v5  ;;  %v272_v10 = vsub.f32 %v264_v2, %v268_v6  ;;  %v273_v11 = vsub.f32 %v265_v3, %v269_v7  ;;  %s313_s21 = sshll.u32 %s804_s19, 4  ;;  %s437_s28 = sshll.u32 %s646_s12, 7  ;;  %s810_s21 = int_to_ptr.vmem [resolvable:$true] %s313_s21 }
  0x3e   : > { %v274_v12 = vsub.f32 %v266_v4, %v270_v8  ;;  %s311_s7 = scalar_lea.hbm %s858_s2, %s437_s28  ;;  %s299_s8 = scalar_lea.sflag [#allocation4], %s791_s25 }
  0x3f   : > { %v275_v13 = vmul.f32 %v271_v9, %v271_v9  ;;  %v276_v14 = vmul.f32 %v272_v10, %v272_v10  ;;  %v277_v15 = vmul.f32 %v273_v11, %v273_v11  ;;  %s570_s15 = scalar_lea.vmem %s810_s21, 128  ;;  %s661_s12 = smov [#allocation7]  }
  0x40   : > { %v278_v16 = vmul.f32 %v274_v12, %v274_v12  ;;  %p571_p8 = scmp.ne.s32.totalorder %s810_s21, %s570_s15  ;;  %s574_s16 = sshll.u32 %s661_s12, 4  ;;  %s575_s16 = int_to_ptr.vmem [resolvable:$false] %s574_s16 }
  0x41   : > { %v280_v17 = vsel %vm279_vm0, %v275_v13, 0.0  ;;  %v281_v18 = vsel %vm279_vm0, %v276_v14, 0.0  ;;  %v283_v20 = vsel %vm279_vm0, %v277_v15, 0.0  ;;  %s576_s30 = scalar_lea.vmem %s575_s16, 256  ;;  %p577_p5 = scmp.lt.s32.totalorder %s810_s21, %s575_s16 }
  0x42   : > { %v282_v19 = vadd.f32 %v281_v18, %v280_v17  ;;  %v285_v21 = vsel %vm279_vm0, %v278_v16, 0.0  ;;  %v295_v27 = vld [vmem:[%s804_s19] sm:$0x3]  ;;  %p572_p0 = pnand %p571_p8, %p728_p9  ;;  %p578_p6 = scmp.lt.s32.totalorder %s576_s30, %s570_s15 }
  0x44   : > { %v284_v22 = vadd.f32 %v283_v20, %v282_v19  ;;  %p573_p2 = pneg %p572_p0  ;;  %p579_p4 = por %p578_p6, %p577_p5 }
  0x46   : > { %v286_v23 = vadd.f32 %v285_v21, %v284_v22  ;;  %p580_p7 = pnand %p579_p4, %p573_p2 }
  0x48   : > { %512 = vrsqrt.f32 %v286_v23  ;;  %vm289_vm1 = vcmp.eq.f32.partialorder %v286_v23, inf  ;;  %v292_v25 = vand.u32 2147483648, %v286_v23  ;;  %vm291_vm2 = vcmp.eq.f32.partialorder %v286_v23, 0.0 }
  0x55   : > { %v513_v24 = vpop.eup %512 }
  0x56   : > { %v288_v26 = vmul.f32 %v513_v24, %v286_v23 }
  0x58   : > { %v290_v28 = vsel %vm289_vm1, %v286_v23, %v288_v26 }
  0x59   : > { %v293_v29 = vsel %vm291_vm2, %v292_v25, %v290_v28 }
  0x5a   : > { %v296_v30 = vadd.f32 %v295_v27, %v293_v29 }
  0x5c   : > { %297 = vst [vmem:[%s804_s19] sm:$0x3] %v296_v30 }
  0x5d   : > { %583 = shalt.err (!%p580_p7)
}
  0x5e   : > { %s584_s4 = scalar_lea.hbm %s311_s7, 128  ;;  %s588_s26 = scalar_lea.hbm %s858_s2, 256 }
  0x5f   : > { %p585_p10 = scmp.ne.s32.totalorder %s311_s7, %s584_s4  ;;  %p589_p3 = scmp.lt.s32.totalorder %s311_s7, %s858_s2 }
  0x60   : > { %p590_p8 = scmp.lt.s32.totalorder %s588_s26, %s584_s4 }
  0x61   : > { %p586_p1 = pnand %p585_p10, %p728_p9 }
  0x62   : > { %p591_p0 = por %p590_p8, %p589_p3 }
  0x63   : > { %p587_p13 = pneg %p586_p1 }
  0x65   : > { %p592_p12 = pnand %p591_p0, %p587_p13 }
  0x67   : > { %595 = shalt.err (!%p592_p12)
}
  0x68   : > { %446 = dma.vmem_to_hbm [thread:$0]  (%p728_p9), %s810_s21, 128, %s311_s7, %s299_s8  }
  0x69 PF: > { %s325_s5 = sand.u32 1, %s634_s9   ;;  %p865_p2 = scmp.ge.s32.totalorder %s654_s14, 2 }
  0x6a   : > { %s326_s18 = scalar_lea.sflag [#allocation4], %s325_s5 }
  0x6b   : > { %p456_p5 = pnand %p865_p2, %p735_p11 }
  0x6d   : > { %p457_p6 = pneg %p456_p5 }
  0x6f   : > { %629 = dma.done.wait (%p457_p6), %s326_s18, 128  }
  0x70   : > { %631 = vsyncadd (%p457_p6), %s326_s18, 4294967168  ;;  %s21_s14 = sadd.s32 1, %s654_s14   ;;  %s866_s9 = smov %s638_s10 }
  0x71   : > { %p18_p4 = scmp.ge.s32.totalorder %s21_s14, 4   ;;  %s867_s10 = smov %s642_s11 }
  0x72   : > { %s868_s11 = smov %s733_s23  ;;  %s869_s12 = smov %s650_s13 }
  0x73   : > { %s870_s13 = smov %s872_s17  ;;  %20 = sbr.rel (!%p18_p4) target bundleno = 8 (0x8), region = 94 }
  0x78   :  { %331 = vsyncpa [#allocation3], 1 }
  0x79   :  { %333 = vsyncpa [#allocation3 + $0x1], 1 }
  0x7a   :  { %334 = vsyncpa [#allocation6], 1 }
  0x7b   :  { %336 = vsyncpa [#allocation6 + $0x1], 1 }
  0x7c   :  { %337 = vsyncpa [#allocation4], 1 }
  0x7d   :  { %339 = vsyncpa [#allocation4 + $0x1], 1 }

</bundles_post_ra>
